<compile_context>
chip_gen: v7x
topology: tpu7x:2x2x1
jax: 0.10.0
libtpu: 0.0.40
codegen_flags: <defaults>
</compile_context>

<pallas_src>
import functools

import jax
import jax.numpy as jnp
from jax.experimental import pallas as pl
from jax.experimental.pallas import tpu as pltpu

LANE = 128
SUBLANE = 8


def _round_up(v, m):
    return (v + m - 1) // m * m


def _make_fused_kernel(config):
    """config: tuple of (aggregate: bool, activation: str, true_f_out: int)."""
    n_layers = len(config)
    any_agg = any(c[0] for c in config)

    def kernel(*refs):
        idx = 0
        a_ref = None
        if any_agg:
            a_ref = refs[idx]
            idx += 1
        x_ref = refs[idx]
        idx += 1
        wb_refs = refs[idx:idx + 2 * n_layers]
        o_ref = refs[idx + 2 * n_layers]

        h = x_ref[...]
        for li, (aggregate, activation, f_true) in enumerate(config):
            w_ref = wb_refs[2 * li]
            b_ref = wb_refs[2 * li + 1]
            # X @ W on the MXU, f32 accumulation.
            h = jnp.dot(h, w_ref[...], preferred_element_type=jnp.float32)
            if aggregate:
                # GCN message passing as a dense matmul with normalized adjacency.
                h = jnp.dot(a_ref[...], h, preferred_element_type=jnp.float32)
            h = h + b_ref[...]
            if activation == "relu":
                h = jnp.maximum(h, 0.0)
            elif activation == "log_softmax":
                # Mask the zero-padded feature columns out of the softmax.
                col = jax.lax.broadcasted_iota(jnp.int32, h.shape, 1)
                h = jnp.where(col < f_true, h, jnp.float32(-1e30))
                m = jnp.max(h, axis=-1, keepdims=True)
                s = h - m
                lse = jnp.log(jnp.sum(jnp.exp(s), axis=-1, keepdims=True))
                h = s - lse
            # activation == "identity" -> no-op
        o_ref[...] = h.astype(o_ref.dtype)

    return kernel


@functools.partial(jax.jit, static_argnums=(0,))
def _gnn_forward_fused(config, a_pad, x_pad, *wb_pad):
    """One fused pallas_call over the whole component stack (all blocks in VMEM)."""
    kernel = _make_fused_kernel(config)
    n_pad, f_pad = x_pad.shape
    vmem = pl.BlockSpec(memory_space=pltpu.MemorySpace.VMEM)
    any_agg = any(c[0] for c in config)
    inputs = ((a_pad,) if any_agg else ()) + (x_pad,) + tuple(wb_pad)
    return pl.pallas_call(
        kernel,
        out_shape=jax.ShapeDtypeStruct((n_pad, f_pad), jnp.float32),
        in_specs=[vmem] * len(inputs),
        out_specs=vmem,
    )(*inputs)


def gcn_norm(edge_index, num_nodes):
    """Dense D^{-1/2} (A + I) D^{-1/2} (GCNConv default normalization).

    Self-loops are set idempotently (diag = 1), matching PyG's add_self_loops
    even if edge_index already contains self-loops.
    """
    src = edge_index[0]
    dst = edge_index[1]
    a = jnp.zeros((num_nodes, num_nodes), jnp.float32)
    a = a.at[dst, src].set(1.0)  # message src -> dst
    diag = jnp.arange(num_nodes)
    a = a.at[diag, diag].set(1.0)
    deg = jnp.sum(a, axis=1)
    d_inv_sqrt = jax.lax.rsqrt(deg)
    return a * d_inv_sqrt[:, None] * d_inv_sqrt[None, :]


def gnn_forward(weights, config, x, edge_index):
    """Mirrors GNN.forward: dropout (identity in eval) -> layer -> activation,
    fused into one Pallas kernel.

    weights: list of (w, b); w is (f_in, f_out) (transposed vs. torch), b (1, f_out).
    config:  list of (is_graph_layer: bool, activation: str) per component.
    """
    n, f_in = x.shape
    n_pad = _round_up(n, SUBLANE)
    f_pad = LANE  # all feature widths here are <= 128; pad to one lane-dense width
    assert f_in <= f_pad and all(w.shape[1] <= f_pad for w, _ in weights), \
        "feature dims > 128 would need a grid"  # TODO(synk): grid-tile wide features

    a_norm = gcn_norm(edge_index, n)
    a_pad = jnp.pad(a_norm, ((0, n_pad - n), (0, n_pad - n)))
    x_pad = jnp.pad(x, ((0, n_pad - n), (0, f_pad - f_in)))

    wb_pad = []
    kcfg = []
    for (w, b), (is_graph, act) in zip(weights, config):
        wb_pad.append(jnp.pad(w, ((0, f_pad - w.shape[0]), (0, f_pad - w.shape[1]))))
        wb_pad.append(jnp.pad(b, ((0, 0), (0, f_pad - b.shape[1]))))
        kcfg.append((bool(is_graph), str(act), int(w.shape[1])))

    out_pad = _gnn_forward_fused(tuple(kcfg), a_pad, x_pad, *wb_pad)
    f_out = weights[-1][0].shape[1]
    return out_pad[:n, :f_out]


def _ref_forward(weights, config, x, edge_index):
    """Pure-JAX reference (no Pallas) for correctness checking."""
    a_norm = gcn_norm(edge_index, x.shape[0])
    h = x
    for (w, b), (is_graph, act) in zip(weights, config):
        h = h @ w
        if is_graph:
            h = a_norm @ h
        h = h + b
        if act == "relu":
            h = jnp.maximum(h, 0.0)
        elif act == "log_softmax":
            h = jax.nn.log_softmax(h, axis=-1)
    return h


def init_params(key, dims):
    """Deterministic synthetic parameter init (this is not a checkpoint load)."""
    weights = []
    for f_in, f_out in dims:
        key, kw, kb = jax.random.split(key, 3)
        w = jax.random.normal(kw, (f_in, f_out), jnp.float32) * (1.0 / jnp.sqrt(f_in))
        b = jax.random.normal(kb, (1, f_out), jnp.float32) * 0.01
        weights.append((w, b))
    return weights


if __name__ == "__main__":
    key = jax.random.PRNGKey(0)

    num_nodes, f_in, hidden, f_out = 8, 16, 32, 8

    # Components: two GCNConv layers + one Linear head.
    dims = [(f_in, hidden), (hidden, hidden), (hidden, f_out)]
    config = [(True, "relu"), (True, "relu"), (False, "log_softmax")]

    key, kp, kx = jax.random.split(key, 3)
    weights = init_params(kp, dims)

    x = jax.random.normal(kx, (num_nodes, f_in), jnp.float32)
    # Small ring graph (bidirectional edges), COO edge_index of shape (2, E).
    src = jnp.arange(num_nodes, dtype=jnp.int32)
    dst = (src + 1) % num_nodes
    edge_index = jnp.stack(
        [jnp.concatenate([src, dst]), jnp.concatenate([dst, src])], axis=0
    )

    out = gnn_forward(weights, config, x, edge_index)
    out = jax.block_until_ready(out)

    assert out.shape == (num_nodes, f_out)
    assert bool(jnp.all(jnp.isfinite(out)))
    # log_softmax rows should (log-)normalize to ~1 in probability space.
    assert bool(jnp.allclose(jnp.sum(jnp.exp(out), axis=-1), 1.0, atol=1e-4))
    # Match the pure-JAX reference.
    ref = _ref_forward(weights, config, x, edge_index)
    assert bool(jnp.allclose(out, ref, atol=1e-4, rtol=1e-4))
    print("KERNEL_OK")
</pallas_src>

<mosaic_0001>
module attributes {stable_mosaic.version = 11 : i64} {
  func.func @kernel(%arg0: memref<8x8xf32, #tpu.memory_space<vmem>>, %arg1: memref<8x128xf32, #tpu.memory_space<vmem>>, %arg2: memref<128x128xf32, #tpu.memory_space<vmem>>, %arg3: memref<1x128xf32, #tpu.memory_space<vmem>>, %arg4: memref<128x128xf32, #tpu.memory_space<vmem>>, %arg5: memref<1x128xf32, #tpu.memory_space<vmem>>, %arg6: memref<128x128xf32, #tpu.memory_space<vmem>>, %arg7: memref<1x128xf32, #tpu.memory_space<vmem>>, %arg8: memref<8x128xf32, #tpu.memory_space<vmem>>) attributes {dimension_semantics = [], scalar_prefetch = 0 : i64, scratch_operands = 0 : i64, tpu.core_type = #tpu.core_type<tc>} {
    %c0 = arith.constant 0 : index
    %c0_0 = arith.constant 0 : index
    %0 = vector.load %arg1[%c0, %c0_0] : memref<8x128xf32, #tpu.memory_space<vmem>>, vector<8x128xf32>
    %c0_1 = arith.constant 0 : index
    %c0_2 = arith.constant 0 : index
    %1 = vector.load %arg2[%c0_1, %c0_2] : memref<128x128xf32, #tpu.memory_space<vmem>>, vector<128x128xf32>
    %cst = arith.constant dense<0.000000e+00> : vector<8x128xf32>
    %2 = tpu.matmul %0, %1, %cst {dimension_numbers = #tpu.dot_dimension_numbers<[1], [0], [0], [1], [0, 0, 1, 1], [], []>} : vector<8x128xf32>, vector<128x128xf32>, vector<8x128xf32> -> vector<8x128xf32>
    %c0_3 = arith.constant 0 : index
    %c0_4 = arith.constant 0 : index
    %3 = vector.load %arg0[%c0_3, %c0_4] : memref<8x8xf32, #tpu.memory_space<vmem>>, vector<8x8xf32>
    %cst_5 = arith.constant dense<0.000000e+00> : vector<8x128xf32>
    %4 = tpu.matmul %3, %2, %cst_5 {dimension_numbers = #tpu.dot_dimension_numbers<[1], [0], [0], [1], [0, 0, 1, 1], [], []>} : vector<8x8xf32>, vector<8x128xf32>, vector<8x128xf32> -> vector<8x128xf32>
    %c0_6 = arith.constant 0 : index
    %c0_7 = arith.constant 0 : index
    %5 = vector.load %arg3[%c0_6, %c0_7] : memref<1x128xf32, #tpu.memory_space<vmem>>, vector<1x128xf32>
    %6 = vector.broadcast %5 : vector<1x128xf32> to vector<8x128xf32>
    %7 = arith.addf %4, %6 : vector<8x128xf32>
    %cst_8 = arith.constant 0.000000e+00 : f32
    %8 = vector.broadcast %cst_8 : f32 to vector<8x128xf32>
    %9 = arith.maximumf %7, %8 : vector<8x128xf32>
    %c0_9 = arith.constant 0 : index
    %c0_10 = arith.constant 0 : index
    %10 = vector.load %arg4[%c0_9, %c0_10] : memref<128x128xf32, #tpu.memory_space<vmem>>, vector<128x128xf32>
    %cst_11 = arith.constant dense<0.000000e+00> : vector<8x128xf32>
    %11 = tpu.matmul %9, %10, %cst_11 {dimension_numbers = #tpu.dot_dimension_numbers<[1], [0], [0], [1], [0, 0, 1, 1], [], []>} : vector<8x128xf32>, vector<128x128xf32>, vector<8x128xf32> -> vector<8x128xf32>
    %c0_12 = arith.constant 0 : index
    %c0_13 = arith.constant 0 : index
    %12 = vector.load %arg0[%c0_12, %c0_13] : memref<8x8xf32, #tpu.memory_space<vmem>>, vector<8x8xf32>
    %cst_14 = arith.constant dense<0.000000e+00> : vector<8x128xf32>
    %13 = tpu.matmul %12, %11, %cst_14 {dimension_numbers = #tpu.dot_dimension_numbers<[1], [0], [0], [1], [0, 0, 1, 1], [], []>} : vector<8x8xf32>, vector<8x128xf32>, vector<8x128xf32> -> vector<8x128xf32>
    %c0_15 = arith.constant 0 : index
    %c0_16 = arith.constant 0 : index
    %14 = vector.load %arg5[%c0_15, %c0_16] : memref<1x128xf32, #tpu.memory_space<vmem>>, vector<1x128xf32>
    %15 = vector.broadcast %14 : vector<1x128xf32> to vector<8x128xf32>
    %16 = arith.addf %13, %15 : vector<8x128xf32>
    %cst_17 = arith.constant 0.000000e+00 : f32
    %17 = vector.broadcast %cst_17 : f32 to vector<8x128xf32>
    %18 = arith.maximumf %16, %17 : vector<8x128xf32>
    %c0_18 = arith.constant 0 : index
    %c0_19 = arith.constant 0 : index
    %19 = vector.load %arg6[%c0_18, %c0_19] : memref<128x128xf32, #tpu.memory_space<vmem>>, vector<128x128xf32>
    %cst_20 = arith.constant dense<0.000000e+00> : vector<8x128xf32>
    %20 = tpu.matmul %18, %19, %cst_20 {dimension_numbers = #tpu.dot_dimension_numbers<[1], [0], [0], [1], [0, 0, 1, 1], [], []>} : vector<8x128xf32>, vector<128x128xf32>, vector<8x128xf32> -> vector<8x128xf32>
    %c0_21 = arith.constant 0 : index
    %c0_22 = arith.constant 0 : index
    %21 = vector.load %arg7[%c0_21, %c0_22] : memref<1x128xf32, #tpu.memory_space<vmem>>, vector<1x128xf32>
    %22 = vector.broadcast %21 : vector<1x128xf32> to vector<8x128xf32>
    %23 = arith.addf %20, %22 : vector<8x128xf32>
    %24 = tpu.iota {dimensions = array<i32: 1>} : vector<8x128xi32>
    %c8_i32 = arith.constant 8 : i32
    %25 = vector.broadcast %c8_i32 : i32 to vector<8x128xi32>
    %26 = arith.cmpi slt, %24, %25 : vector<8x128xi32>
    %cst_23 = arith.constant -1.000000e+30 : f32
    %27 = vector.broadcast %cst_23 : f32 to vector<8x128xf32>
    %28 = arith.select %26, %23, %27 : vector<8x128xi1>, vector<8x128xf32>
    %cst_24 = arith.constant dense<0xFF800000> : vector<8xf32>
    %29 = vector.multi_reduction <maximumf>, %28, %cst_24 [1] : vector<8x128xf32> to vector<8xf32>
    %30 = vector.shape_cast %29 : vector<8xf32> to vector<8x1xf32>
    %31 = vector.broadcast %30 : vector<8x1xf32> to vector<8x128xf32>
    %32 = arith.subf %28, %31 : vector<8x128xf32>
    %33 = math.exp %32 : vector<8x128xf32>
    %cst_25 = arith.constant dense<0.000000e+00> : vector<8xf32>
    %34 = vector.multi_reduction <add>, %33, %cst_25 [1] : vector<8x128xf32> to vector<8xf32>
    %35 = vector.shape_cast %34 : vector<8xf32> to vector<8x1xf32>
    %36 = math.log %35 : vector<8x1xf32>
    %37 = vector.broadcast %36 : vector<8x1xf32> to vector<8x128xf32>
    %38 = arith.subf %32, %37 : vector<8x128xf32>
    %c0_26 = arith.constant 0 : index
    %c0_27 = arith.constant 0 : index
    %39 = vector.load %arg8[%c0_26, %c0_27] : memref<8x128xf32, #tpu.memory_space<vmem>>, vector<8x128xf32>
    tpu.vector_store %arg8[%c0_26, %c0_27], %38 {strides = array<i32>} : memref<8x128xf32, #tpu.memory_space<vmem>>, vector<8x128xf32>,
    return
  }
}

</mosaic_0001>

<bundles_post_ra>
// kernel: _gnn_forward_fused.1
= control target key start
LH: loop header
LB: loop body
LE: loop exit
PB: predicated region body
PF: predicated region fallthrough
CT: control target
= control target key end

     0   :  { %13 = vsyncpa [#allocation3], 0  ;;  %s1139_s0 = inlined_call_operand.hbm [shape: f32[8,8], index: 0, kind: input, shape index: {}]   ;;  %s1140_s1 = inlined_call_operand.hbm [shape: f32[8,128], index: 1, kind: input, shape index: {}]   ;;  %s1141_s2 = inlined_call_operand.hbm [shape: f32[128,128], index: 2, kind: input, shape index: {}]   ;;  %s1142_s3 = inlined_call_operand.vmem [shape: f32[1,128], index: 3, kind: input, shape index: {}]   ;;  %s1143_s4 = inlined_call_operand.hbm [shape: f32[128,128], index: 4, kind: input, shape index: {}]   ;;  %s1144_s5 = inlined_call_operand.vmem [shape: f32[1,128], index: 5, kind: input, shape index: {}]   ;;  %s1145_s6 = inlined_call_operand.hbm [shape: f32[128,128], index: 6, kind: input, shape index: {}]   ;;  %s1146_s7 = inlined_call_operand.vmem [shape: f32[1,128], index: 7, kind: input, shape index: {}]   ;;  %s1147_s8 = inlined_call_operand.hbm [shape: f32[8,128], index: 8, kind: output, shape index: {}]  }
   0x1   :  { %14 = vsyncpa [#allocation6], 0 }
   0x2   :  { %15 = vsyncpa [#allocation9], 0 }
   0x3   :  { %16 = vsyncpa [#allocation4], 0  ;;  %s955_s27 = smov [#allocation5]   ;;  %s815_s9 = scalar_lea.hbm %s1140_s1, 128 }
   0x4   :  { %s33_s28 = sshll.u32 %s955_s27, 4  ;;  %p816_p0 = scmp.ne.s32.totalorder %s1140_s1, %s815_s9  ;;  %s34_s28 = int_to_ptr.vmem [resolvable:$true] %s33_s28 }
   0x5   :  { %p819_p1 = scmp.lt.u32.totalorder %s815_s9, %s1140_s1 }
   0x7   :  { %p821_p2 = pnand %p819_p1, %p816_p0 }
   0x9   :  { %824 = shalt.err (!%p821_p2)
}
   0xa   :  { %s825_s14 = scalar_lea.vmem %s34_s28, 128  ;;  %p830_p4 = scmp.lt.s32.totalorder %s34_s28, %s34_s28 }
   0xb   :  { %p826_p3 = scmp.ne.s32.totalorder %s34_s28, %s825_s14  ;;  %p831_p5 = scmp.lt.s32.totalorder %s825_s14, %s825_s14 }
   0xd   :  { %p832_p6 = por %p831_p5, %p830_p4 }
   0xf   :  { %p833_p7 = pnand %p832_p6, %p826_p3 }
  0x11   :  { %836 = shalt.err (!%p833_p7)
}
  0x12   :  { %36 = dma.hbm_to_vmem [thread:$0]  %s1140_s1, 128, %s34_s28, [#allocation6]  }
  0x13   :  { %s956_s17 = smov [#allocation8]   ;;  %s957_s19 = smov [#allocation2]  }
  0x14   :  { %s56_s18 = sshll.u32 %s956_s17, 4  ;;  %s23_s20 = sshll.u32 %s957_s19, 4  ;;  %s57_s18 = int_to_ptr.vmem [resolvable:$true] %s56_s18  ;;  %s24_s20 = int_to_ptr.vmem [resolvable:$true] %s23_s20 }
  0x15   :  { %s837_s23 = scalar_lea.hbm %s1143_s4, 2048 }
  0x16   :  { %p838_p8 = scmp.ne.s32.totalorder %s1143_s4, %s837_s23  ;;  %p841_p9 = scmp.lt.u32.totalorder %s837_s23, %s1143_s4 }
  0x18   :  { %p843_p10 = pnand %p841_p9, %p838_p8 }
  0x1a   :  { %846 = shalt.err (!%p843_p10)
}
  0x1b   :  { %s847_s1 = scalar_lea.vmem %s57_s18, 2048  ;;  %p852_p12 = scmp.lt.s32.totalorder %s57_s18, %s57_s18 }
  0x1c   :  { %p848_p11 = scmp.ne.s32.totalorder %s57_s18, %s847_s1  ;;  %p853_p13 = scmp.lt.s32.totalorder %s847_s1, %s847_s1 }
  0x1e   :  { %p854_p0 = por %p853_p13, %p852_p12 }
  0x20   :  { %p855_p1 = pnand %p854_p0, %p848_p11 }
  0x22   :  { %858 = shalt.err (!%p855_p1)
}
  0x23   :  { %s958_s28 = smov 128   ;;  %s959_s29 = smov 8  }
  0x24   :  { %62 = dma.hbm_to_vmem [thread:$0]  %s1143_s4, 2048, %s57_s18, [#allocation9], %s958_s28, %s958_s28, %s959_s29  }
  0x25   :  { %s859_s12 = scalar_lea.hbm %s1139_s0, 128 }
  0x26   :  { %p860_p2 = scmp.ne.s32.totalorder %s1139_s0, %s859_s12  ;;  %p863_p3 = scmp.lt.u32.totalorder %s859_s12, %s1139_s0 }
  0x28   :  { %p865_p4 = pnand %p863_p3, %p860_p2 }
  0x2a   :  { %868 = shalt.err (!%p865_p4)
}
  0x2b   :  { %s869_s17 = scalar_lea.vmem %s24_s20, 128  ;;  %p874_p6 = scmp.lt.s32.totalorder %s24_s20, %s24_s20 }
  0x2c   :  { %p870_p5 = scmp.ne.s32.totalorder %s24_s20, %s869_s17  ;;  %p875_p7 = scmp.lt.s32.totalorder %s869_s17, %s869_s17 }
  0x2e   :  { %p876_p8 = por %p875_p7, %p874_p6 }
  0x30   :  { %p877_p9 = pnand %p876_p8, %p870_p5 }
  0x32   :  { %880 = shalt.err (!%p877_p9)
}
  0x33   :  { %26 = dma.hbm_to_vmem [thread:$0]  %s1139_s0, 128, %s24_s20, [#allocation3]  }
  0x34   :  { %s960_s19 = smov [#allocation7]   ;;  %s961_s22 = smov [#allocation10]  }
  0x35   :  { %s42_s21 = sshll.u32 %s960_s19, 4  ;;  %s70_s23 = sshll.u32 %s961_s22, 4  ;;  %s43_s21 = int_to_ptr.vmem [resolvable:$true] %s42_s21  ;;  %s71_s23 = int_to_ptr.vmem [resolvable:$true] %s70_s23 }
  0x36   :  { %s881_s26 = scalar_lea.hbm %s1141_s2, 2048 }
  0x37   :  { %p882_p10 = scmp.ne.s32.totalorder %s1141_s2, %s881_s26  ;;  %p885_p11 = scmp.lt.u32.totalorder %s881_s26, %s1141_s2 }
  0x39   :  { %p887_p12 = pnand %p885_p11, %p882_p10 }
  0x3b   :  { %890 = shalt.err (!%p887_p12)
}
  0x3c   :  { %s891_s0 = scalar_lea.vmem %s43_s21, 2048  ;;  %p896_p0 = scmp.lt.s32.totalorder %s43_s21, %s43_s21 }
  0x3d   :  { %p892_p13 = scmp.ne.s32.totalorder %s43_s21, %s891_s0  ;;  %p897_p1 = scmp.lt.s32.totalorder %s891_s0, %s891_s0 }
  0x3f   :  { %p898_p2 = por %p897_p1, %p896_p0 }
  0x41   :  { %p899_p3 = pnand %p898_p2, %p892_p13 }
  0x43   :  { %902 = shalt.err (!%p899_p3)
}
  0x44   :  { %48 = dma.hbm_to_vmem [thread:$0]  %s1141_s2, 2048, %s43_s21, [#allocation6], %s958_s28, %s958_s28, %s959_s29  }
  0x45   :  { %s903_s13 = scalar_lea.hbm %s1145_s6, 2048 }
  0x46   :  { %p904_p4 = scmp.ne.s32.totalorder %s1145_s6, %s903_s13  ;;  %p907_p5 = scmp.lt.u32.totalorder %s903_s13, %s1145_s6 }
  0x48   :  { %p909_p6 = pnand %p907_p5, %p904_p4 }
  0x4a   :  { %912 = shalt.err (!%p909_p6)
}
  0x4b   :  { %s913_s4 = scalar_lea.vmem %s71_s23, 2048  ;;  %p918_p8 = scmp.lt.s32.totalorder %s71_s23, %s71_s23 }
  0x4c   :  { %p914_p7 = scmp.ne.s32.totalorder %s71_s23, %s913_s4  ;;  %p919_p9 = scmp.lt.s32.totalorder %s913_s4, %s913_s4 }
  0x4e   :  { %p920_p10 = por %p919_p9, %p918_p8 }
  0x50   :  { %p921_p11 = pnand %p920_p10, %p914_p7 }
  0x52   :  { %924 = shalt.err (!%p921_p11)
}
  0x53   :  { %76 = dma.hbm_to_vmem [thread:$0]  %s1145_s6, 2048, %s71_s23, [#allocation9], %s958_s28, %s958_s28, %s959_s29  }
  0x54   :  { %947 = dma.done.wait [#allocation3], 128  }
  0x55   :  { %948 = vsyncadd [#allocation3], 4294967168 }
  0x56   :  { %949 = dma.done.wait [#allocation6], 2176  }
  0x57   :  { %950 = vsyncadd [#allocation6], 4294965120 }
  0x58   :  { %951 = dma.done.wait [#allocation9], 4096  }
  0x59   :  { %952 = vsyncadd [#allocation9], 4294963200  ;;  %v962_v0 = vmov 0.0|0.0   ;;  %vm963_vm0 = vmmov 0   ;;  %v964_v1 = vmov 0.0   ;;  %v95_v2 = vld [vmem:[#allocation7] sm:$0xff] }
  0x5a   :  { %728 = vmatprep.subr.bf16.mxu0 %v962_v0  ;;  %645 = vmatprep.mubr.msk.f32.mxu0 %vm963_vm0, %v964_v1  ;;  %v96_v3 = vld [vmem:[#allocation7 + $0x8] sm:$0xff]  ;;  %v97_v4 = vld [vmem:[#allocation7 + $0x10] sm:$0xff]  ;;  %v98_v6 = vld [vmem:[#allocation7 + $0x18] sm:$0xff]  ;;  %vm189_vm1 = vcmask 64512  }
  0x5b   :  { %752 = vmatprep.subr.bf16.mxu1 %v962_v0  ;;  %685 = vmatprep.mubr.msk.f32.mxu1 %vm963_vm0, %v964_v1  ;;  %v729_v5 = vpack.c.bf16 %v96_v3, %v95_v2  ;;  %v732_v7 = vpack.c.bf16 %v98_v6, %v97_v4  ;;  %v99_v8 = vld [vmem:[#allocation7 + $0x20] sm:$0xff]  ;;  %v100_v9 = vld [vmem:[#allocation7 + $0x28] sm:$0xff]  ;;  %v101_v11 = vld [vmem:[#allocation7 + $0x30] sm:$0xff] }
  0x5c   :  { %v735_v10 = vpack.c.bf16 %v100_v9, %v99_v8  ;;  %v102_v12 = vld [vmem:[#allocation7 + $0x38] sm:$0xff]  ;;  %v103_v14 = vld [vmem:[#allocation7 + $0x40] sm:$0xff]  ;;  %v104_v15 = vld [vmem:[#allocation7 + $0x48] sm:$0xff] }
  0x5d   :  { %730 = vmatpush3.bf16.msra.mxu0 %v729_v5  ;;  %v738_v13 = vpack.c.bf16 %v102_v12, %v101_v11  ;;  %v741_v16 = vpack.c.bf16 %v104_v15, %v103_v14  ;;  %v105_v17 = vld [vmem:[#allocation7 + $0x50] sm:$0xff]  ;;  %v106_v18 = vld [vmem:[#allocation7 + $0x58] sm:$0xff]  ;;  %v107_v20 = vld [vmem:[#allocation7 + $0x60] sm:$0xff] }
  0x5e   :  { %731 = vmatprep.subr.bf16.mxu0 %v962_v0  ;;  %v744_v19 = vpack.c.bf16 %v106_v18, %v105_v17  ;;  %v108_v21 = vld [vmem:[#allocation7 + $0x68] sm:$0xff]  ;;  %v109_v23 = vld [vmem:[#allocation7 + $0x70] sm:$0xff]  ;;  %v110_v24 = vld [vmem:[#allocation7 + $0x78] sm:$0xff] }
  0x5f   :  { %v747_v22 = vpack.c.bf16 %v108_v21, %v107_v20  ;;  %v750_v25 = vpack.c.bf16 %v110_v24, %v109_v23  ;;  %v94_v26 = vld [vmem:[#allocation5] sm:$0xff]  ;;  %v264_v27 = vld [vmem:[#allocation8] sm:$0xff]  ;;  %v265_v28 = vld [vmem:[#allocation8 + $0x8] sm:$0xff] }
  0x60   :  { %v266_v29 = vld [vmem:[#allocation8 + $0x10] sm:$0xff]  ;;  %v753_v30 = vpack.c.bf16 %v265_v28, %v264_v27  ;;  %v267_v31 = vld [vmem:[#allocation8 + $0x18] sm:$0xff]  ;;  %v268_v33 = vld [vmem:[#allocation8 + $0x20] sm:$0xff]  ;;  %v521_v27 = vlaneseq }
  0x61   :  { %733 = vmatpush3.bf16.msra.mxu0 %v732_v7  ;;  %v756_v32 = vpack.c.bf16 %v267_v31, %v266_v29  ;;  %v269_v34 = vld [vmem:[#allocation8 + $0x28] sm:$0xff]  ;;  %v270_v36 = vld [vmem:[#allocation8 + $0x30] sm:$0xff]  ;;  %v271_v37 = vld [vmem:[#allocation8 + $0x38] sm:$0xff] }
  0x62   :  { %734 = vmatprep.subr.bf16.mxu0 %v962_v0  ;;  %754 = vmatpush3.bf16.msra.mxu1 %v753_v30  ;;  %v759_v35 = vpack.c.bf16 %v269_v34, %v268_v33  ;;  %v762_v38 = vpack.c.bf16 %v271_v37, %v270_v36  ;;  %v272_v39 = vld [vmem:[#allocation8 + $0x40] sm:$0xff]  ;;  %v273_v40 = vld [vmem:[#allocation8 + $0x48] sm:$0xff]  ;;  %v274_v42 = vld [vmem:[#allocation8 + $0x50] sm:$0xff] }
  0x63   :  { %755 = vmatprep.subr.bf16.mxu1 %v962_v0  ;;  %v765_v41 = vpack.c.bf16 %v273_v40, %v272_v39  ;;  %v275_v43 = vld [vmem:[#allocation8 + $0x58] sm:$0xff]  ;;  %v276_v45 = vld [vmem:[#allocation8 + $0x60] sm:$0xff]  ;;  %v277_v46 = vld [vmem:[#allocation8 + $0x68] sm:$0xff] }
  0x64   :  { %v768_v44 = vpack.c.bf16 %v275_v43, %v274_v42  ;;  %v771_v47 = vpack.c.bf16 %v277_v46, %v276_v45  ;;  %v181_v48 = vld [vmem:[#allocation2] sm:$0xff]  ;;  %v279_v52 = vld [vmem:[#allocation8 + $0x78] sm:$0xff]  ;;  %v428_v59 = vld [vmem:[#allocation10] sm:$0xff] }
  0x65   :  { %736 = vmatpush3.bf16.msra.mxu0 %v735_v10  ;;  %v278_v51 = vld [vmem:[#allocation8 + $0x70] sm:$0xff]  ;;  %v429_v60 = vld [vmem:[#allocation10 + $0x8] sm:$0xff]  ;;  %v431_v63 = vld [vmem:[#allocation10 + $0x18] sm:$0xff] }
  0x66   :  { %737 = vmatprep.subr.bf16.mxu0 %v962_v0  ;;  %757 = vmatpush3.bf16.msra.mxu1 %v756_v32  ;;  %v774_v53 = vpack.c.bf16 %v279_v52, %v278_v51  ;;  %v553_v54 = vld [vmem:[%s1142_s3] ss:$0 sm:$0xff]  ;;  %v777_v62 = vpack.c.bf16 %v429_v60, %v428_v59  ;;  %v432_v3 = vld [vmem:[#allocation10 + $0x20] sm:$0xff]  ;;  %v433_v4 = vld [vmem:[#allocation10 + $0x28] sm:$0xff] }
  0x67   :  { %758 = vmatprep.subr.bf16.mxu1 %v962_v0  ;;  %v430_v61 = vld [vmem:[#allocation10 + $0x10] sm:$0xff]  ;;  %v783_v5 = vpack.c.bf16 %v433_v4, %v432_v3  ;;  %v435_v7 = vld [vmem:[#allocation10 + $0x38] sm:$0xff]  ;;  %v437_v9 = vld [vmem:[#allocation10 + $0x48] sm:$0xff] }
  0x68   :  { %v780_v2 = vpack.c.bf16 %v431_v63, %v430_v61  ;;  %v434_v6 = vld [vmem:[#allocation10 + $0x30] sm:$0xff]  ;;  %v439_v12 = vld [vmem:[#allocation10 + $0x58] sm:$0xff]  ;;  %v440_v14 = vld [vmem:[#allocation10 + $0x60] sm:$0xff] }
  0x69   :  { %739 = vmatpush3.bf16.msra.mxu0 %v738_v13  ;;  %v786_v8 = vpack.c.bf16 %v435_v7, %v434_v6  ;;  %v438_v11 = vld [vmem:[#allocation10 + $0x50] sm:$0xff]  ;;  %v441_v15 = vld [vmem:[#allocation10 + $0x68] sm:$0xff]  ;;  %v443_v20 = vld [vmem:[#allocation10 + $0x78] sm:$0xff] }
  0x6a   :  { %740 = vmatprep.subr.bf16.mxu0 %v962_v0  ;;  %760 = vmatpush3.bf16.msra.mxu1 %v759_v35  ;;  %v792_v13 = vpack.c.bf16 %v439_v12, %v438_v11  ;;  %v557_v28 = vld [vmem:[%s1146_s7] ss:$0 sm:$0xff] }
  0x6b   :  { %761 = vmatprep.subr.bf16.mxu1 %v962_v0 }
  0x6d   :  { %742 = vmatpush3.bf16.msra.mxu0 %v741_v16  ;;  %v795_v16 = vpack.c.bf16 %v441_v15, %v440_v14 }
  0x6e   :  { %743 = vmatprep.subr.bf16.mxu0 %v962_v0  ;;  %763 = vmatpush3.bf16.msra.mxu1 %v762_v38 }
  0x6f   :  { %764 = vmatprep.subr.bf16.mxu1 %v962_v0 }
  0x71   :  { %745 = vmatpush3.bf16.msra.mxu0 %v744_v19  ;;  %v442_v19 = vld [vmem:[#allocation10 + $0x70] sm:$0xff] }
  0x72   :  { %746 = vmatprep.subr.bf16.mxu0 %v962_v0  ;;  %766 = vmatpush3.bf16.msra.mxu1 %v765_v41  ;;  %v798_v21 = vpack.c.bf16 %v443_v20, %v442_v19 }
  0x73   :  { %767 = vmatprep.subr.bf16.mxu1 %v962_v0 }
  0x75   :  { %748 = vmatpush3.bf16.msra.mxu0 %v747_v22  ;;  %v555_v22 = vld [vmem:[%s1144_s5] ss:$0 sm:$0xff]  ;;  %s965_s5 = smov [#allocation11]  }
  0x76   :  { %749 = vmatprep.subr.bf16.mxu0 %v962_v0  ;;  %769 = vmatpush3.bf16.msra.mxu1 %v768_v44  ;;  %s542_s22 = sshll.u32 %s965_s5, 4  ;;  %s543_s22 = int_to_ptr.vmem [resolvable:$true] %s542_s22 }
  0x77   :  { %770 = vmatprep.subr.bf16.mxu1 %v962_v0  ;;  %s925_s7 = scalar_lea.vmem %s543_s22, 128  ;;  %p930_p13 = scmp.lt.s32.totalorder %s543_s22, %s543_s22 }
  0x78   :  { %p926_p12 = scmp.ne.s32.totalorder %s543_s22, %s925_s7  ;;  %p931_p0 = scmp.lt.s32.totalorder %s925_s7, %s925_s7 }
  0x79   :  { %751 = vmatpush3.bf16.msra.mxu0 %v750_v25 }
  0x7a   :  { %648 = vmatprep.subr.mxu0 %v964_v1  ;;  %772 = vmatpush3.bf16.msra.mxu1 %v771_v47  ;;  %p932_p1 = por %p931_p0, %p930_p13 }
  0x7b   :  { %773 = vmatprep.subr.bf16.mxu1 %v962_v0 }
  0x7c   :  { %646 = vmatmul.mubr.f32.vlgmr.msra.gmra.mrb[0].mxu0 %v94_v26  ;;  %p933_p2 = pnand %p932_p1, %p926_p12 }
  0x7d   :  { %650 = vmatprep.mubr.msk.f32.mxu0 %vm963_vm0, %v964_v1 }
  0x7e   :  { %775 = vmatpush3.bf16.msra.mxu1 %v774_v53 }
  0x7f   :  { %776 = vmatprep.subr.bf16.mxu1 %v962_v0 }
 0x14f   :  { %v177_v49 = vpop.f32.mrb[0].mxu0 }
 0x150   :  { %v647_v50 = vpop.f32.mrb[1].mxu0  ;;  %649 = vmatpush3.msra.mxu0 %v177_v49 }
 0x151   :  { %651 = vmatmul.mubr.msk.f32.vlgmr.msra.gmra.mrb[2].mxu0 %vm189_vm1, %v181_v48  ;;  %688 = vmatprep.subr.mxu0 %v964_v1 }
 0x152   :  { %690 = vmatprep.mubr.msk.f32.mxu0 %vm963_vm0, %v964_v1 }
 0x224   :  { %v259_v55 = vpop.f32.mrb[2].mxu0 }
 0x225   :  { %v260_v56 = vadd.f32 %v553_v54, %v259_v55  ;;  %v652_v57 = vpop.f32.mrb[3].mxu0 }
 0x227   :  { %v263_v58 = vmax.f32 %v260_v56, 0.0 }
 0x229   :  { %686 = vmatmul.mubr.f32.vlgmr.msra.gmra.mrb[0].mxu1 %v263_v58 }
 0x22a   :  { %725 = vmatprep.mubr.msk.f32.mxu1 %vm963_vm0, %v964_v1  ;;  %778 = vmatpush3.bf16.msra.mxu1 %v777_v62  ;;  %v436_v1 = vld [vmem:[#allocation10 + $0x40] sm:$0xff] }
 0x22b   :  { %779 = vmatprep.subr.bf16.mxu1 %v962_v0  ;;  %v789_v10 = vpack.c.bf16 %v437_v9, %v436_v1 }
 0x22e   :  { %781 = vmatpush3.bf16.msra.mxu1 %v780_v2 }
 0x22f   :  { %782 = vmatprep.subr.bf16.mxu1 %v962_v0 }
 0x232   :  { %784 = vmatpush3.bf16.msra.mxu1 %v783_v5 }
 0x233   :  { %785 = vmatprep.subr.bf16.mxu1 %v962_v0 }
 0x236   :  { %787 = vmatpush3.bf16.msra.mxu1 %v786_v8 }
 0x237   :  { %788 = vmatprep.subr.bf16.mxu1 %v962_v0 }
 0x23a   :  { %790 = vmatpush3.bf16.msra.mxu1 %v789_v10 }
 0x23b   :  { %791 = vmatprep.subr.bf16.mxu1 %v962_v0 }
 0x23e   :  { %793 = vmatpush3.bf16.msra.mxu1 %v792_v13 }
 0x23f   :  { %794 = vmatprep.subr.bf16.mxu1 %v962_v0 }
 0x242   :  { %796 = vmatpush3.bf16.msra.mxu1 %v795_v16 }
 0x243   :  { %797 = vmatprep.subr.bf16.mxu1 %v962_v0  ;;  %v522_v0 = vand.u32 127, %v521_v27 }
 0x245   :  { %vm523_vm2 = vcmp.lt.s32.totalorder %v522_v0, 8 }
 0x246   :  { %799 = vmatpush3.bf16.msra.mxu1 %v798_v21 }
 0x2fc   :  { %v346_v17 = vpop.f32.mrb[0].mxu1 }
 0x2fd   :  { %v687_v18 = vpop.f32.mrb[1].mxu1  ;;  %689 = vmatpush3.msra.mxu0 %v346_v17 }
 0x2fe   :  { %691 = vmatmul.mubr.msk.f32.vlgmr.msra.gmra.mrb[4].mxu0 %vm189_vm1, %v181_v48 }
 0x3d1   :  { %v423_v23 = vpop.f32.mrb[4].mxu0 }
 0x3d2   :  { %v424_v24 = vadd.f32 %v555_v22, %v423_v23  ;;  %v692_v25 = vpop.f32.mrb[5].mxu0 }
 0x3d4   :  { %v427_v26 = vmax.f32 %v424_v24, 0.0 }
 0x3d6   :  { %726 = vmatmul.mubr.f32.vlgmr.msra.gmra.mrb[2].mxu1 %v427_v26 }
 0x4a9   :  { %v517_v29 = vpop.f32.mrb[2].mxu1 }
 0x4aa   :  { %v518_v30 = vadd.f32 %v557_v28, %v517_v29  ;;  %v727_v31 = vpop.f32.mrb[3].mxu1 }
 0x4ac   :  { %v524_v32 = vsel %vm523_vm2, %v518_v30, -1e+30 }
 0x4ad   :  { %525 = vmax.xlane.f32.xlu0 %v524_v32 }
 0x53a   :  { %v526_v33 = vpop.xlane.xlu0 %525 }
 0x53b   :  { %v527_v34 = vsub.f32 %v524_v32, %v526_v33 }
 0x53d   :  { %v528_v35 = vmul.f32 1.442695, %v527_v34 }
 0x53f   :  { %811 = vpow2.f32 %v528_v35 }
 0x549   :  { %v812_v36 = vpop.eup %811 }
 0x54a   :  { %530 = vadd.xlane.f32.xlu0 %v812_v36 }
 0x5d7   :  { %v531_v37 = vpop.xlane.xlu0 %530 }
 0x5d8   :  { %813 = vlog2.f32 %v531_v37 }
 0x5e2   :  { %v814_v38 = vpop.eup %813 }
 0x5e3   :  { %v533_v39 = vmul.f32 0.6931472, %v814_v38 }
 0x5e5   :  { %v534_v40 = vsub.f32 %v527_v34, %v533_v39 }
 0x5e7   :  { %535 = vst [vmem:[#allocation11] sm:$0xff] %v534_v40 }
 0x5e8   :  { %936 = shalt.err (!%p933_p2)
}
 0x5e9   :  { %s937_s25 = scalar_lea.hbm %s1147_s8, 128 }
 0x5ea   :  { %p938_p3 = scmp.ne.s32.totalorder %s1147_s8, %s937_s25  ;;  %p941_p4 = scmp.lt.u32.totalorder %s937_s25, %s1147_s8 }
 0x5ec   :  { %p943_p5 = pnand %p941_p4, %p938_p3 }
 0x5ee   :  { %946 = shalt.err (!%p943_p5)
}
 0x5ef   :  { %545 = dma.vmem_to_hbm [thread:$0]  %s543_s22, 128, %s1147_s8, [#allocation4]  }
 0x5f0   :  { %953 = dma.done.wait [#allocation4], 128  }
 0x5f1   :  { %954 = vsyncadd [#allocation4], 4294967168 }
 0x5f2   :  { %549 = vsyncpa [#allocation3], 1 }
 0x5f3   :  { %550 = vsyncpa [#allocation6], 1 }
 0x5f4   :  { %551 = vsyncpa [#allocation9], 1 }
 0x5f5   :  { %552 = vsyncpa [#allocation4], 1 }

</bundles_post_ra>
